<compile_context>
chip_gen: v7x
topology: tpu7x:2x2x1
jax: 0.10.0
libtpu: 0.0.40
codegen_flags: <defaults>
</compile_context>

<pallas_src>
import functools

import jax
import jax.numpy as jnp
from jax.experimental import pallas as pl
from jax.experimental.pallas import tpu as pltpu

_TILE_N_MAX = 4096  # lane-tile width; >=2048 keeps this mem-bound kernel near HBM roofline


def _pu_stats_kernel(logits_ref, targets_ref, out_ref, acc_ref, *, n_total, num_classes):
    # logits_ref : (C, TILE_N) native dtype in VMEM
    # targets_ref: (1, TILE_N) int32 in VMEM
    # out_ref    : (5,) f32 in SMEM
    # acc_ref    : (8, TILE_N) f32 VMEM scratch (rows 0..4 used)
    step = pl.program_id(0)
    num_steps = pl.num_programs(0)
    tile_n = acc_ref.shape[1]

    @pl.when(step == 0)
    def _init():
        acc_ref[...] = jnp.zeros_like(acc_ref)

    # Load class rows; cast to f32 only after the (native-dtype) DMA.
    rows = [logits_ref[c:c + 1, :].astype(jnp.float32) for c in range(num_classes)]

    # Lane-dense, max-stabilized logsumexp over the small static class axis.
    m = rows[0]
    for r in rows[1:]:
        m = jnp.maximum(m, r)
    s = jnp.zeros_like(m)
    for r in rows:
        s = s + jnp.exp(r - m)
    lse = m + jnp.log(s)

    ce0 = lse - rows[0]  # CE term if target class == 0
    ce1 = lse - rows[1]  # CE term if target class == 1

    t = targets_ref[...]  # (1, TILE_N) int32
    col = jax.lax.broadcasted_iota(jnp.int32, (1, tile_n), 1) + step * tile_n
    valid = col < n_total  # mask padded columns of the tail tile
    pos = jnp.logical_and(valid, t == 1)
    unl = jnp.logical_and(valid, t == 0)

    zero = jnp.zeros_like(ce0)
    # Lane-wise accumulation only (VPU adds); cross-lane reduction deferred.
    acc_ref[0:1, :] += jnp.where(pos, ce1, zero)   # sum CE(pos rows, class 1)
    acc_ref[1:2, :] += jnp.where(pos, ce0, zero)   # sum CE(pos rows, class 0)
    acc_ref[2:3, :] += jnp.where(unl, ce0, zero)   # sum CE(unl rows, class 0)
    acc_ref[3:4, :] += pos.astype(jnp.float32)     # n_positive
    acc_ref[4:5, :] += unl.astype(jnp.float32)     # n_unlabeled

    @pl.when(step == num_steps - 1)
    def _finalize():
        out_ref[0] = jnp.sum(acc_ref[0:1, :])
        out_ref[1] = jnp.sum(acc_ref[1:2, :])
        out_ref[2] = jnp.sum(acc_ref[2:3, :])
        out_ref[3] = jnp.sum(acc_ref[3:4, :])
        out_ref[4] = jnp.sum(acc_ref[4:5, :])


def _pu_stats(logits, targets, tile_n=None):
    n, c = logits.shape
    if c < 2:
        raise ValueError('PULoss needs at least 2 logit classes')

    # Lane-dense layout: classes on sublanes, batch on lanes (native dtype).
    logits_t = jnp.transpose(logits)                      # (C, N)
    targets_2d = targets.astype(jnp.int32).reshape(1, n)  # (1, N)

    if tile_n is None:
        # Either the full (possibly unaligned) batch as one block, or a
        # 128-aligned tile with masked tail handling in-kernel.
        tile_n = n if n <= _TILE_N_MAX else _TILE_N_MAX
    num_steps = pl.cdiv(n, tile_n)

    kernel = functools.partial(_pu_stats_kernel, n_total=n, num_classes=c)

    cost = pl.CostEstimate(
        flops=8 * n * c,
        transcendentals=n * (c + 1),
        bytes_accessed=n * c * logits.dtype.itemsize + n * 4 + 5 * 4,
    )

    return pl.pallas_call(
        kernel,
        out_shape=jax.ShapeDtypeStruct((5,), jnp.float32),
        grid_spec=pltpu.PrefetchScalarGridSpec(
            num_scalar_prefetch=0,
            grid=(num_steps,),
            in_specs=[
                pl.BlockSpec((c, tile_n), lambda i: (0, i)),
                pl.BlockSpec((1, tile_n), lambda i: (0, i)),
            ],
            out_specs=pl.BlockSpec(memory_space=pltpu.SMEM),
            scratch_shapes=[pltpu.VMEM((8, tile_n), jnp.float32)],
        ),
        compiler_params=pltpu.CompilerParams(
            dimension_semantics=("arbitrary",)),
        cost_estimate=cost,
    )(logits_t, targets_2d)


def pu_loss(logits, targets, prior: float, loss_fn: str, tile_n=None):
    """JAX/Pallas equivalent of PULoss.forward.

    logits: (N, C) float array, targets: (N,) int array of {0, 1} labels.
    prior / loss_fn are static Python config (as in the module __init__).
    """
    if not 0 < prior < 1:
        raise ValueError('The class prior should be in [0, 1]')

    stats = _pu_stats(logits, targets, tile_n=tile_n)
    sum_pos_ce1 = stats[0]
    sum_pos_ce0 = stats[1]
    sum_unl_ce0 = stats[2]
    n_pos = stats[3]
    n_unl = stats[4]

    # CrossEntropyLoss means (0.0 when the subset is empty, as in the torch code)
    loss_positive = jnp.where(n_pos > 0, sum_pos_ce1 / jnp.maximum(n_pos, 1.0), 0.0)
    loss_pos_inv = jnp.where(n_pos > 0, sum_pos_ce0 / jnp.maximum(n_pos, 1.0), 0.0)
    loss_unlabeled = jnp.where(n_unl > 0, sum_unl_ce0 / jnp.maximum(n_unl, 1.0), 0.0)

    loss_negative = loss_unlabeled - prior * loss_pos_inv

    if prior == 0:  # unreachable given the check above; kept for parity with torch
        p = n_pos / (n_pos + n_unl)
        return p * loss_unlabeled + (1.0 - p) * loss_positive
    elif loss_fn == 'nnPU':
        return jnp.where(loss_negative < 0,
                         -loss_negative,
                         prior * loss_positive + loss_negative)
    elif loss_fn == 'uPU':
        return prior * loss_positive + loss_negative
    else:
        raise ValueError('Unsupported Loss')


def _pu_loss_ref(logits, targets, prior, loss_fn):
    """Pure-JAX reference matching the torch module semantics."""
    x = logits.astype(jnp.float32)
    lse = jax.nn.logsumexp(x, axis=-1)
    ce0 = lse - x[:, 0]
    ce1 = lse - x[:, 1]
    pos = targets == 1
    unl = targets == 0
    n_pos = jnp.sum(pos.astype(jnp.float32))
    n_unl = jnp.sum(unl.astype(jnp.float32))
    loss_positive = jnp.where(
        n_pos > 0, jnp.sum(jnp.where(pos, ce1, 0.0)) / jnp.maximum(n_pos, 1.0), 0.0)
    loss_pos_inv = jnp.where(
        n_pos > 0, jnp.sum(jnp.where(pos, ce0, 0.0)) / jnp.maximum(n_pos, 1.0), 0.0)
    loss_unlabeled = jnp.where(
        n_unl > 0, jnp.sum(jnp.where(unl, ce0, 0.0)) / jnp.maximum(n_unl, 1.0), 0.0)
    loss_negative = loss_unlabeled - prior * loss_pos_inv
    if loss_fn == 'nnPU':
        return jnp.where(loss_negative < 0,
                         -loss_negative,
                         prior * loss_positive + loss_negative)
    return prior * loss_positive + loss_negative


if __name__ == "__main__":
    key = jax.random.PRNGKey(0)
    k_logits, k_targets, k2_logits, k2_targets = jax.random.split(key, 4)

    # Small case consistent with the module: (N, C) logits, binary targets.
    N, C = 8, 4
    logits = jax.random.normal(k_logits, (N, C), dtype=jnp.float32)
    targets = jax.random.bernoulli(k_targets, p=0.5, shape=(N,)).astype(jnp.int32)

    loss_nnpu = jax.block_until_ready(pu_loss(logits, targets, prior=0.3, loss_fn='nnPU'))
    loss_upu = jax.block_until_ready(pu_loss(logits, targets, prior=0.3, loss_fn='uPU'))
    assert loss_nnpu.shape == () and loss_upu.shape == ()

    ref_nnpu = _pu_loss_ref(logits, targets, 0.3, 'nnPU')
    ref_upu = _pu_loss_ref(logits, targets, 0.3, 'uPU')
    assert jnp.allclose(loss_nnpu, ref_nnpu, atol=1e-5, rtol=1e-5)
    assert jnp.allclose(loss_upu, ref_upu, atol=1e-5, rtol=1e-5)

    # Multi-tile path with a masked tail (tile_n=128, N=300 -> 3 grid steps).
    N2, C2 = 300, 2
    logits2 = jax.random.normal(k2_logits, (N2, C2), dtype=jnp.float32)
    targets2 = jax.random.bernoulli(k2_targets, p=0.4, shape=(N2,)).astype(jnp.int32)
    loss2 = jax.block_until_ready(
        pu_loss(logits2, targets2, prior=0.5, loss_fn='nnPU', tile_n=128))
    ref2 = _pu_loss_ref(logits2, targets2, 0.5, 'nnPU')
    assert jnp.allclose(loss2, ref2, atol=1e-5, rtol=1e-5)

    print("KERNEL_OK")
</pallas_src>

<mosaic_0001>
module attributes {stable_mosaic.version = 11 : i64} {
  func.func @_pu_stats_kernel(%arg0: i32, %arg1: memref<4x8xf32, #tpu.memory_space<vmem>>, %arg2: memref<1x8xi32, #tpu.memory_space<vmem>>, %arg3: memref<5xf32, #tpu.memory_space<smem>>, %arg4: memref<8x8xf32, #tpu.memory_space<vmem>>) attributes {dimension_semantics = [#tpu.dimension_semantics<arbitrary>], iteration_bounds = array<i64: 1>, scalar_prefetch = 0 : i64, scratch_operands = 1 : i64, tpu.core_type = #tpu.core_type<tc>, window_params = [{transform_indices = @transform_0, window_bounds = array<i64: 4, 8>}, {transform_indices = @transform_1, window_bounds = array<i64: 1, 8>}, {transform_indices = @transform_2, window_bounds = array<i64: 5>}]} {
    %c0_i32 = arith.constant 0 : i32
    %0 = arith.cmpi eq, %arg0, %c0_i32 : i32
    %1 = arith.extui %0 : i1 to i32
    %c0_i32_0 = arith.constant 0 : i32
    %2 = arith.cmpi ne, %1, %c0_i32_0 : i32
    scf.if %2 {
      %cst_31 = arith.constant 0.000000e+00 : f32
      %66 = vector.broadcast %cst_31 : f32 to vector<8x8xf32>
      %c0_32 = arith.constant 0 : index
      %c0_33 = arith.constant 0 : index
      %67 = vector.load %arg4[%c0_32, %c0_33] : memref<8x8xf32, #tpu.memory_space<vmem>>, vector<8x8xf32>
      tpu.vector_store %arg4[%c0_32, %c0_33], %66 {strides = array<i32>} : memref<8x8xf32, #tpu.memory_space<vmem>>, vector<8x8xf32>,
    } else {
    }
    %c0 = arith.constant 0 : index
    %c0_1 = arith.constant 0 : index
    %3 = vector.load %arg1[%c0, %c0_1] : memref<4x8xf32, #tpu.memory_space<vmem>>, vector<1x8xf32>
    %c1 = arith.constant 1 : index
    %c0_2 = arith.constant 0 : index
    %4 = vector.load %arg1[%c1, %c0_2] : memref<4x8xf32, #tpu.memory_space<vmem>>, vector<1x8xf32>
    %c2 = arith.constant 2 : index
    %c0_3 = arith.constant 0 : index
    %5 = vector.load %arg1[%c2, %c0_3] : memref<4x8xf32, #tpu.memory_space<vmem>>, vector<1x8xf32>
    %c3 = arith.constant 3 : index
    %c0_4 = arith.constant 0 : index
    %6 = vector.load %arg1[%c3, %c0_4] : memref<4x8xf32, #tpu.memory_space<vmem>>, vector<1x8xf32>
    %7 = arith.maximumf %3, %4 : vector<1x8xf32>
    %8 = arith.maximumf %7, %5 : vector<1x8xf32>
    %9 = arith.maximumf %8, %6 : vector<1x8xf32>
    %cst = arith.constant 0.000000e+00 : f32
    %10 = vector.broadcast %cst : f32 to vector<1x8xf32>
    %11 = arith.subf %3, %9 : vector<1x8xf32>
    %12 = math.exp %11 : vector<1x8xf32>
    %13 = arith.addf %10, %12 : vector<1x8xf32>
    %14 = arith.subf %4, %9 : vector<1x8xf32>
    %15 = math.exp %14 : vector<1x8xf32>
    %16 = arith.addf %13, %15 : vector<1x8xf32>
    %17 = arith.subf %5, %9 : vector<1x8xf32>
    %18 = math.exp %17 : vector<1x8xf32>
    %19 = arith.addf %16, %18 : vector<1x8xf32>
    %20 = arith.subf %6, %9 : vector<1x8xf32>
    %21 = math.exp %20 : vector<1x8xf32>
    %22 = arith.addf %19, %21 : vector<1x8xf32>
    %23 = math.log %22 : vector<1x8xf32>
    %24 = arith.addf %9, %23 : vector<1x8xf32>
    %25 = arith.subf %24, %3 : vector<1x8xf32>
    %26 = arith.subf %24, %4 : vector<1x8xf32>
    %c0_5 = arith.constant 0 : index
    %c0_6 = arith.constant 0 : index
    %27 = vector.load %arg2[%c0_5, %c0_6] : memref<1x8xi32, #tpu.memory_space<vmem>>, vector<1x8xi32>
    %28 = tpu.iota {dimensions = array<i32: 1>} : vector<1x8xi32>
    %c8_i32 = arith.constant 8 : i32
    %29 = arith.muli %arg0, %c8_i32 : i32
    %30 = vector.broadcast %29 : i32 to vector<1x8xi32>
    %31 = arith.addi %28, %30 : vector<1x8xi32>
    %c8_i32_7 = arith.constant 8 : i32
    %32 = vector.broadcast %c8_i32_7 : i32 to vector<1x8xi32>
    %33 = arith.cmpi slt, %31, %32 : vector<1x8xi32>
    %c1_i32 = arith.constant 1 : i32
    %34 = vector.broadcast %c1_i32 : i32 to vector<1x8xi32>
    %35 = arith.cmpi eq, %27, %34 : vector<1x8xi32>
    %36 = arith.andi %33, %35 : vector<1x8xi1>
    %c0_i32_8 = arith.constant 0 : i32
    %37 = vector.broadcast %c0_i32_8 : i32 to vector<1x8xi32>
    %38 = arith.cmpi eq, %27, %37 : vector<1x8xi32>
    %39 = arith.andi %33, %38 : vector<1x8xi1>
    %cst_9 = arith.constant 0.000000e+00 : f32
    %40 = vector.broadcast %cst_9 : f32 to vector<1x8xf32>
    %c0_10 = arith.constant 0 : index
    %c0_11 = arith.constant 0 : index
    %41 = vector.load %arg4[%c0_10, %c0_11] : memref<8x8xf32, #tpu.memory_space<vmem>>, vector<1x8xf32>
    %42 = arith.select %36, %26, %40 : vector<1x8xi1>, vector<1x8xf32>
    %43 = arith.addf %41, %42 : vector<1x8xf32>
    %c0_12 = arith.constant 0 : index
    %c0_13 = arith.constant 0 : index
    %44 = vector.load %arg4[%c0_12, %c0_13] : memref<8x8xf32, #tpu.memory_space<vmem>>, vector<1x8xf32>
    tpu.vector_store %arg4[%c0_12, %c0_13], %43 {strides = array<i32>} : memref<8x8xf32, #tpu.memory_space<vmem>>, vector<1x8xf32>,
    %c1_14 = arith.constant 1 : index
    %c0_15 = arith.constant 0 : index
    %45 = vector.load %arg4[%c1_14, %c0_15] : memref<8x8xf32, #tpu.memory_space<vmem>>, vector<1x8xf32>
    %46 = arith.select %36, %25, %40 : vector<1x8xi1>, vector<1x8xf32>
    %47 = arith.addf %45, %46 : vector<1x8xf32>
    %c1_16 = arith.constant 1 : index
    %c0_17 = arith.constant 0 : index
    %48 = vector.load %arg4[%c1_16, %c0_17] : memref<8x8xf32, #tpu.memory_space<vmem>>, vector<1x8xf32>
    tpu.vector_store %arg4[%c1_16, %c0_17], %47 {strides = array<i32>} : memref<8x8xf32, #tpu.memory_space<vmem>>, vector<1x8xf32>,
    %c2_18 = arith.constant 2 : index
    %c0_19 = arith.constant 0 : index
    %49 = vector.load %arg4[%c2_18, %c0_19] : memref<8x8xf32, #tpu.memory_space<vmem>>, vector<1x8xf32>
    %50 = arith.select %39, %25, %40 : vector<1x8xi1>, vector<1x8xf32>
    %51 = arith.addf %49, %50 : vector<1x8xf32>
    %c2_20 = arith.constant 2 : index
    %c0_21 = arith.constant 0 : index
    %52 = vector.load %arg4[%c2_20, %c0_21] : memref<8x8xf32, #tpu.memory_space<vmem>>, vector<1x8xf32>
    tpu.vector_store %arg4[%c2_20, %c0_21], %51 {strides = array<i32>} : memref<8x8xf32, #tpu.memory_space<vmem>>, vector<1x8xf32>,
    %c3_22 = arith.constant 3 : index
    %c0_23 = arith.constant 0 : index
    %53 = vector.load %arg4[%c3_22, %c0_23] : memref<8x8xf32, #tpu.memory_space<vmem>>, vector<1x8xf32>
    %54 = arith.extui %36 : vector<1x8xi1> to vector<1x8xi32>
    %55 = arith.sitofp %54 : vector<1x8xi32> to vector<1x8xf32>
    %56 = arith.addf %53, %55 : vector<1x8xf32>
    %c3_24 = arith.constant 3 : index
    %c0_25 = arith.constant 0 : index
    %57 = vector.load %arg4[%c3_24, %c0_25] : memref<8x8xf32, #tpu.memory_space<vmem>>, vector<1x8xf32>
    tpu.vector_store %arg4[%c3_24, %c0_25], %56 {strides = array<i32>} : memref<8x8xf32, #tpu.memory_space<vmem>>, vector<1x8xf32>,
    %c4 = arith.constant 4 : index
    %c0_26 = arith.constant 0 : index
    %58 = vector.load %arg4[%c4, %c0_26] : memref<8x8xf32, #tpu.memory_space<vmem>>, vector<1x8xf32>
    %59 = arith.extui %39 : vector<1x8xi1> to vector<1x8xi32>
    %60 = arith.sitofp %59 : vector<1x8xi32> to vector<1x8xf32>
    %61 = arith.addf %58, %60 : vector<1x8xf32>
    %c4_27 = arith.constant 4 : index
    %c0_28 = arith.constant 0 : index
    %62 = vector.load %arg4[%c4_27, %c0_28] : memref<8x8xf32, #tpu.memory_space<vmem>>, vector<1x8xf32>
    tpu.vector_store %arg4[%c4_27, %c0_28], %61 {strides = array<i32>} : memref<8x8xf32, #tpu.memory_space<vmem>>, vector<1x8xf32>,
    %c0_i32_29 = arith.constant 0 : i32
    %63 = arith.cmpi eq, %arg0, %c0_i32_29 : i32
    %64 = arith.extui %63 : i1 to i32
    %c0_i32_30 = arith.constant 0 : i32
    %65 = arith.cmpi ne, %64, %c0_i32_30 : i32
    scf.if %65 {
      %c0_31 = arith.constant 0 : index
      %c0_32 = arith.constant 0 : index
      %66 = vector.load %arg4[%c0_31, %c0_32] : memref<8x8xf32, #tpu.memory_space<vmem>>, vector<1x8xf32>
      %67 = vector.shape_cast %66 : vector<1x8xf32> to vector<1x1x8xf32>
      %cst_33 = arith.constant dense<0.000000e+00> : vector<1xf32>
      %68 = vector.multi_reduction <add>, %67, %cst_33 [1, 2] : vector<1x1x8xf32> to vector<1xf32>
      %69 = vector.shape_cast %68 : vector<1xf32> to vector<1x1x1xf32>
      %70 = vector.extract %69[0, 0, 0] : f32 from vector<1x1x1xf32>
      %c0_34 = arith.constant 0 : index
      %71 = memref.load %arg3[%c0_34] : memref<5xf32, #tpu.memory_space<smem>>
      memref.store %70, %arg3[%c0_34] : memref<5xf32, #tpu.memory_space<smem>>
      %c1_35 = arith.constant 1 : index
      %c0_36 = arith.constant 0 : index
      %72 = vector.load %arg4[%c1_35, %c0_36] : memref<8x8xf32, #tpu.memory_space<vmem>>, vector<1x8xf32>
      %73 = vector.shape_cast %72 : vector<1x8xf32> to vector<1x1x8xf32>
      %cst_37 = arith.constant dense<0.000000e+00> : vector<1xf32>
      %74 = vector.multi_reduction <add>, %73, %cst_37 [1, 2] : vector<1x1x8xf32> to vector<1xf32>
      %75 = vector.shape_cast %74 : vector<1xf32> to vector<1x1x1xf32>
      %76 = vector.extract %75[0, 0, 0] : f32 from vector<1x1x1xf32>
      %c1_38 = arith.constant 1 : index
      %77 = memref.load %arg3[%c1_38] : memref<5xf32, #tpu.memory_space<smem>>
      memref.store %76, %arg3[%c1_38] : memref<5xf32, #tpu.memory_space<smem>>
      %c2_39 = arith.constant 2 : index
      %c0_40 = arith.constant 0 : index
      %78 = vector.load %arg4[%c2_39, %c0_40] : memref<8x8xf32, #tpu.memory_space<vmem>>, vector<1x8xf32>
      %79 = vector.shape_cast %78 : vector<1x8xf32> to vector<1x1x8xf32>
      %cst_41 = arith.constant dense<0.000000e+00> : vector<1xf32>
      %80 = vector.multi_reduction <add>, %79, %cst_41 [1, 2] : vector<1x1x8xf32> to vector<1xf32>
      %81 = vector.shape_cast %80 : vector<1xf32> to vector<1x1x1xf32>
      %82 = vector.extract %81[0, 0, 0] : f32 from vector<1x1x1xf32>
      %c2_42 = arith.constant 2 : index
      %83 = memref.load %arg3[%c2_42] : memref<5xf32, #tpu.memory_space<smem>>
      memref.store %82, %arg3[%c2_42] : memref<5xf32, #tpu.memory_space<smem>>
      %c3_43 = arith.constant 3 : index
      %c0_44 = arith.constant 0 : index
      %84 = vector.load %arg4[%c3_43, %c0_44] : memref<8x8xf32, #tpu.memory_space<vmem>>, vector<1x8xf32>
      %85 = vector.shape_cast %84 : vector<1x8xf32> to vector<1x1x8xf32>
      %cst_45 = arith.constant dense<0.000000e+00> : vector<1xf32>
      %86 = vector.multi_reduction <add>, %85, %cst_45 [1, 2] : vector<1x1x8xf32> to vector<1xf32>
      %87 = vector.shape_cast %86 : vector<1xf32> to vector<1x1x1xf32>
      %88 = vector.extract %87[0, 0, 0] : f32 from vector<1x1x1xf32>
      %c3_46 = arith.constant 3 : index
      %89 = memref.load %arg3[%c3_46] : memref<5xf32, #tpu.memory_space<smem>>
      memref.store %88, %arg3[%c3_46] : memref<5xf32, #tpu.memory_space<smem>>
      %c4_47 = arith.constant 4 : index
      %c0_48 = arith.constant 0 : index
      %90 = vector.load %arg4[%c4_47, %c0_48] : memref<8x8xf32, #tpu.memory_space<vmem>>, vector<1x8xf32>
      %91 = vector.shape_cast %90 : vector<1x8xf32> to vector<1x1x8xf32>
      %cst_49 = arith.constant dense<0.000000e+00> : vector<1xf32>
      %92 = vector.multi_reduction <add>, %91, %cst_49 [1, 2] : vector<1x1x8xf32> to vector<1xf32>
      %93 = vector.shape_cast %92 : vector<1xf32> to vector<1x1x1xf32>
      %94 = vector.extract %93[0, 0, 0] : f32 from vector<1x1x1xf32>
      %c4_50 = arith.constant 4 : index
      %95 = memref.load %arg3[%c4_50] : memref<5xf32, #tpu.memory_space<smem>>
      memref.store %94, %arg3[%c4_50] : memref<5xf32, #tpu.memory_space<smem>>
    } else {
    }
    return
  }
  func.func @transform_0(%arg0: i32) -> (i32, i32) {
    %c0_i32 = arith.constant 0 : i32
    %c0_i32_0 = arith.constant 0 : i32
    return %c0_i32, %arg0 : i32, i32
  }
  func.func @transform_1(%arg0: i32) -> (i32, i32) {
    %c0_i32 = arith.constant 0 : i32
    %c0_i32_0 = arith.constant 0 : i32
    return %c0_i32, %arg0 : i32, i32
  }
  func.func @transform_2(%arg0: i32) -> i32 {
    %c0_i32 = arith.constant 0 : i32
    %c0_i32_0 = arith.constant 0 : i32
    return %c0_i32 : i32
  }
}

</mosaic_0001>

<bundles_post_ra>
// kernel: tpu_custom_call.1
= control target key start
LH: loop header
LB: loop body
LE: loop exit
PB: predicated region body
PF: predicated region fallthrough
CT: control target
= control target key end

     0   :  { %7 = vsyncpa [#allocation4], 0  ;;  %s308_s0 = inlined_call_operand.hbm [shape: f32[4,8], index: 0, kind: input, shape index: {}]   ;;  %s309_s1 = inlined_call_operand.vmem [shape: s32[1,8], index: 1, kind: input, shape index: {}]   ;;  %s310_s2 = inlined_call_operand.hbm [shape: f32[5], index: 2, kind: output, shape index: {}]  }
   0x1   :  { %8 = vsyncpa [#allocation5], 0  ;;  %s235_s9 = smov [#allocation3]   ;;  %s199_s13 = scalar_lea.hbm %s308_s0, 64 }
   0x2   :  { %s15_s10 = sshll.u32 %s235_s9, 4  ;;  %p200_p0 = scmp.ne.s32.totalorder %s308_s0, %s199_s13  ;;  %s16_s10 = int_to_ptr.vmem [resolvable:$true] %s15_s10 }
   0x3   :  { %p203_p1 = scmp.lt.u32.totalorder %s199_s13, %s308_s0 }
   0x5   :  { %p205_p2 = pnand %p203_p1, %p200_p0 }
   0x7   :  { %208 = shalt.err (!%p205_p2)
}
   0x8   :  { %s209_s18 = scalar_lea.vmem %s16_s10, 64  ;;  %p214_p4 = scmp.lt.s32.totalorder %s16_s10, %s16_s10 }
   0x9   :  { %p210_p3 = scmp.ne.s32.totalorder %s16_s10, %s209_s18  ;;  %p215_p5 = scmp.lt.s32.totalorder %s209_s18, %s209_s18 }
   0xb   :  { %p216_p6 = por %p215_p5, %p214_p4 }
   0xd   :  { %p217_p7 = pnand %p216_p6, %p210_p3 }
   0xf   :  { %220 = shalt.err (!%p217_p7)
}
  0x10   :  { %18 = dma.hbm_to_vmem [thread:$0]  %s308_s0, 64, %s16_s10, [#allocation4]  }
  0x11   :  { %231 = dma.done.wait [#allocation4], 64  }
  0x12   :  { %232 = vsyncadd [#allocation4], 4294967232  ;;  %vm28_vm0 = vcmask 64512   ;;  %v59_v0 = vlaneseq  ;;  %v236_v1 = vmov 0.0   ;;  %v30_v3 = vld [vmem:[#allocation3] sm:$0x1] }
  0x13   :  { %29 = vst.msk [vmem:[#allocation2] sm:$0xff] %vm28_vm0, %v236_v1  ;;  %v31_v4 = vld [vmem:[#allocation3 + $0x1] sm:$0x1]  ;;  %v32_v5 = vld [vmem:[#allocation3 + $0x2] sm:$0x1]  ;;  %vm72_vm6 = vcmask 57344  }
  0x14   :  { %v60_v2 = vand.u32 127, %v59_v0  ;;  %v34_v6 = vmax.f32 %v30_v3, %v31_v4  ;;  %v58_v7 = vld [vmem:[%s309_s1] sm:$0x1]  ;;  %v33_v8 = vld [vmem:[#allocation3 + $0x3] sm:$0x1]  ;;  %s221_s28 = scalar_lea.hbm %s310_s2, 16 }
  0x15   :  { %vm67_vm2 = vcmp.eq.s32.totalorder %v58_v7, 0  ;;  %vm65_vm3 = vcmp.eq.s32.totalorder %v58_v7, 1  ;;  %p222_p8 = scmp.ne.s32.totalorder %s310_s2, %s221_s28  ;;  %p225_p9 = scmp.lt.u32.totalorder %s221_s28, %s310_s2 }
  0x16   :  { %vm64_vm1 = vcmp.lt.s32.totalorder %v60_v2, 8  ;;  %v35_v9 = vmax.f32 %v34_v6, %v32_v5 }
  0x17   :  { %vm268_vm4 = vmand %vm64_vm1, %vm67_vm2  ;;  %p227_p10 = pnand %p225_p9, %p222_p8 }
  0x18   :  { %vm272_vm5 = vmand %vm64_vm1, %vm65_vm3  ;;  %v175_v14 = vsel %vm268_vm4, 1.0, %v236_v1  ;;  %v36_v15 = vmax.f32 %v35_v9, %v33_v8 }
  0x19   :  { %v174_v16 = vsel %vm272_vm5, 1.0, %v236_v1 }
  0x1a   :  { %v82_v11 = vld [vmem:[#allocation2 + $0x3] sm:$0x1]  ;;  %v87_v12 = vld [vmem:[#allocation2 + $0x4] sm:$0x1]  ;;  %v37_v19 = vsub.f32 %v30_v3, %v36_v15  ;;  %v41_v20 = vsub.f32 %v31_v4, %v36_v15  ;;  %v45_v21 = vsub.f32 %v32_v5, %v36_v15  ;;  %v49_v22 = vsub.f32 %v33_v8, %v36_v15  ;;  %v78_v38 = vld [vmem:[#allocation2 + $0x2] sm:$0x1] }
  0x1b   :  { %v90_v17 = vadd.f32 %v175_v14, %v87_v12  ;;  %v85_v18 = vadd.f32 %v174_v16, %v82_v11  ;;  %v69_v40 = vld [vmem:[#allocation2] sm:$0x1]  ;;  %v74_v41 = vld [vmem:[#allocation2 + $0x1] sm:$0x1] }
  0x1c   :  { %v38_v23 = vmul.f32 1.442695, %v37_v19  ;;  %v42_v24 = vmul.f32 1.442695, %v41_v20  ;;  %v46_v25 = vmul.f32 1.442695, %v45_v21 }
  0x1d   :  { %91 = vst.msk [vmem:[#allocation2 + $0x4] sm:$0x1] %vm72_vm6, %v90_v17  ;;  %86 = vst.msk [vmem:[#allocation2 + $0x3] sm:$0x1] %vm72_vm6, %v85_v18  ;;  %v50_v26 = vmul.f32 1.442695, %v49_v22 }
  0x1e   :  { %189 = vpow2.f32 %v38_v23 }
  0x1f   :  { %191 = vpow2.f32 %v42_v24 }
  0x20   :  { %193 = vpow2.f32 %v46_v25 }
  0x21   :  { %195 = vpow2.f32 %v50_v26 }
  0x24   :  { %v134_v48 = vld [vmem:[#allocation2 + $0x3] sm:$0x1]  ;;  %v147_v56 = vld [vmem:[#allocation2 + $0x4] sm:$0x1] }
  0x25   :  { %v135_v54 = vsel %vm72_vm6, %v134_v48, 0.0  ;;  %v148_v57 = vsel %vm72_vm6, %v147_v56, 0.0 }
  0x28   :  { %v190_v27 = vpop.eup %189 }
  0x29   :  { %v192_v28 = vpop.eup %191 }
  0x2a   :  { %v194_v29 = vpop.eup %193  ;;  %v44_v30 = vadd.f32 %v192_v28, %v190_v27 }
  0x2b   :  { %v196_v31 = vpop.eup %195 }
  0x2c   :  { %v48_v32 = vadd.f32 %v194_v29, %v44_v30 }
  0x2e   :  { %v52_v33 = vadd.f32 %v196_v31, %v48_v32 }
  0x30   :  { %197 = vlog2.f32 %v52_v33 }
  0x3a   :  { %v198_v34 = vpop.eup %197 }
  0x3b   :  { %v54_v35 = vmul.f32 0.6931472, %v198_v34 }
  0x3d   :  { %v55_v36 = vadd.f32 %v54_v35, %v36_v15 }
  0x3f   :  { %v56_v37 = vsub.f32 %v55_v36, %v30_v3  ;;  %v57_v39 = vsub.f32 %v55_v36, %v31_v4 }
  0x41   :  { %v79_v42 = vsel %vm268_vm4, %v56_v37, 0.0  ;;  %v70_v43 = vsel %vm272_vm5, %v57_v39, 0.0  ;;  %v75_v44 = vsel %vm272_vm5, %v56_v37, 0.0 }
  0x42   :  { %v80_v45 = vadd.f32 %v79_v42, %v78_v38  ;;  %v71_v46 = vadd.f32 %v70_v43, %v69_v40  ;;  %v76_v47 = vadd.f32 %v75_v44, %v74_v41 }
  0x44   :  { %81 = vst.msk [vmem:[#allocation2 + $0x2] sm:$0x1] %vm72_vm6, %v80_v45  ;;  %73 = vst.msk [vmem:[#allocation2] sm:$0x1] %vm72_vm6, %v71_v46 }
  0x45   :  { %77 = vst.msk [vmem:[#allocation2 + $0x1] sm:$0x1] %vm72_vm6, %v76_v47 }
  0x4b   :  { %v121_v49 = vld [vmem:[#allocation2 + $0x2] sm:$0x1]  ;;  %v95_v50 = vld [vmem:[#allocation2] sm:$0x1] }
  0x4c   :  { %v108_v51 = vld [vmem:[#allocation2 + $0x1] sm:$0x1]  ;;  %v122_v52 = vsel %vm72_vm6, %v121_v49, 0.0  ;;  %v96_v53 = vsel %vm72_vm6, %v95_v50, 0.0 }
  0x4d   :  { %123 = vadd.xlane.f32.xlu1 %v122_v52  ;;  %97 = vadd.xlane.f32.xlu0 %v96_v53  ;;  %v109_v55 = vsel %vm72_vm6, %v108_v51, 0.0 }
  0x51   :  { %136 = vadd.xlane.f32.xlu1 %v135_v54  ;;  %110 = vadd.xlane.f32.xlu0 %v109_v55 }
  0x55   :  { %149 = vadd.xlane.f32.xlu0 %v148_v57 }
  0xda   :  { %v124_v58 = vpop.xlane.xlu1 %123  ;;  %v98_v59 = vpop.xlane.xlu0 %97 }
  0xdb   :  { %v125_v60 = vrot.slane %v124_v58, 4  ;;  %v99_v61 = vrot.slane %v98_v59, 4 }
  0xdd   :  { %v126_v62 = vadd.f32 %v125_v60, %v124_v58  ;;  %v100_v63 = vadd.f32 %v99_v61, %v98_v59 }
  0xde   :  { %v137_v0 = vpop.xlane.xlu1 %136  ;;  %v111_v1 = vpop.xlane.xlu0 %110 }
  0xdf   :  { %v127_v2 = vrot.slane %v126_v62, 2  ;;  %v101_v3 = vrot.slane %v100_v63, 2  ;;  %v138_v4 = vrot.slane %v137_v0, 4  ;;  %v112_v5 = vrot.slane %v111_v1, 4 }
  0xe1   :  { %v139_v6 = vadd.f32 %v138_v4, %v137_v0  ;;  %v113_v7 = vadd.f32 %v112_v5, %v111_v1  ;;  %v102_v8 = vadd.f32 %v101_v3, %v100_v63  ;;  %v128_v10 = vadd.f32 %v127_v2, %v126_v62 }
  0xe2   :  { %v150_v9 = vpop.xlane.xlu0 %149 }
  0xe3   :  { %v140_v11 = vrot.slane %v139_v6, 2  ;;  %v114_v12 = vrot.slane %v113_v7, 2  ;;  %v151_v13 = vrot.slane %v150_v9, 4  ;;  %v103_v14 = vrot.slane %v102_v8, 1 }
  0xe4   :  { %v129_v19 = vrot.slane %v128_v10, 1 }
  0xe5   :  { %v141_v15 = vadd.f32 %v140_v11, %v139_v6  ;;  %v152_v16 = vadd.f32 %v151_v13, %v150_v9  ;;  %v104_v17 = vadd.f32 %v103_v14, %v102_v8  ;;  %v115_v18 = vadd.f32 %v114_v12, %v113_v7 }
  0xe6   :  { %v130_v26 = vadd.f32 %v129_v19, %v128_v10 }
  0xe7   :  { %v153_v20 = vrot.slane %v152_v16, 2  ;;  %176 = vpush %v104_v17  ;;  %v116_v21 = vrot.slane %v115_v18, 1  ;;  %v142_v22 = vrot.slane %v141_v15, 1 }
  0xe9   :  { %v154_v23 = vadd.f32 %v153_v20, %v152_v16  ;;  %v117_v24 = vadd.f32 %v116_v21, %v115_v18  ;;  %v143_v25 = vadd.f32 %v142_v22, %v141_v15 }
  0xeb   :  { %178 = vpush %v117_v24  ;;  %v155_v27 = vrot.slane %v154_v23, 1 }
  0xec   :  { %180 = vpush %v130_v26 }
  0xed   :  { %182 = vpush %v143_v25  ;;  %v156_v28 = vadd.f32 %v155_v27, %v154_v23 }
  0xef   :  { %184 = vpush %v156_v28 }
 0x118   :  { %s177_s0 = spop %176 }
 0x119   :  { %107 = sst [smem:[#allocation6]] %s177_s0 }
 0x11c   :  { %s179_s1 = spop %178 }
 0x11d   :  { %120 = sst [smem:[#allocation6 + $0x1]] %s179_s1  ;;  %s181_s23 = spop %180 }
 0x11e   :  { %133 = sst [smem:[#allocation6 + $0x2]] %s181_s23  ;;  %s183_s24 = spop %182 }
 0x11f   :  { %146 = sst [smem:[#allocation6 + $0x3]] %s183_s24 }
 0x120   :  { %s185_s25 = spop %184 }
 0x121   :  { %159 = sst [smem:[#allocation6 + $0x4]] %s185_s25 }
 0x122   :  { %230 = shalt.err (!%p227_p10)
}
 0x123   :  { %s237_s5 = smov [#allocation6]  }
 0x124   :  { %167 = dma.smem_to_hbm %s237_s5, 16, %s310_s2, [#allocation5]  }
 0x125   :  { %233 = dma.done.wait [#allocation5], 16  }
 0x126   :  { %234 = vsyncadd [#allocation5], 4294967280 }
 0x127   :  { %171 = sfence }
 0x128   :  { %172 = vsyncpa [#allocation4], 1 }
 0x129   :  { %173 = vsyncpa [#allocation5], 1 }

</bundles_post_ra>
